<compile_context>
chip_gen: v5e
topology: v5e:2x2
jax: 0.10.0
libtpu: 0.0.40
codegen_flags: <defaults>
</compile_context>

<pallas_src>
import jax
import jax.numpy as jnp
from jax.experimental import pallas as pl
from jax.experimental.pallas import tpu as pltpu


def _softplus(x):
    # torch.nn.functional.softplus (beta=1, threshold=20), computed in f32.
    return jnp.where(x > 20.0, x, jnp.log1p(jnp.exp(jnp.minimum(x, 20.0))))


def _make_net_kernel(Fp, Dl, H):
    """Kernel for one graph (one grid step); static dims captured by closure."""
    f32 = jnp.float32
    bf16 = jnp.bfloat16

    def kernel(a_ref, feat_ref, w_ref, r_ref, out_ref):
        a = a_ref[...].astype(bf16)                        # (N, N)

        feat = feat_ref[...]                               # (N, Fp+1) f32
        planes = feat[:, :Fp]                              # (N, Fp)
        lanes = feat[:, Fp:Fp + 1]                         # (N, 1)

        rows = r_ref[...]                                  # (6, W) f32
        wlt = rows[0:1, :Dl]                               # (1, Dl)
        blt = rows[1:2, :Dl]                               # (1, Dl)
        b1 = rows[2:3, :H]                                 # (1, H)
        b2 = rows[3:4, :H]                                 # (1, H)
        w3r = rows[4:5, :H]                                # (1, H)  (= w3^T)
        b3 = rows[5:6, 0:1]                                # (1, 1)

        w_all = w_ref[...]                                 # (Fp+Dl+H, H) f32
        w1 = w_all[:Fp + Dl, :].astype(bf16)
        w2 = w_all[Fp + Dl:, :].astype(bf16)
        w1p = w1[:Fp, :]                                   # (Fp, H)
        w1l = w1[Fp:, :]                                   # (Dl, H)

        # num_of_lanes_transform: Linear(1, Dl) == broadcast multiply (VPU).
        lanes_t = _softplus(lanes * wlt + blt)             # (N, Dl) f32

        # layer 1, reordered: h1 = softplus(A @ (X0 @ W1) + b1)
        # (column-split matmul == cat([planes, lanes_t], 1) @ W1)
        z = (jnp.dot(planes.astype(bf16), w1p, preferred_element_type=f32)
             + jnp.dot(lanes_t.astype(bf16), w1l, preferred_element_type=f32))
        h1 = _softplus(
            jnp.dot(a, z.astype(bf16), preferred_element_type=f32) + b1)

        # layer 2: h2 = softplus((A @ h1) @ W2 + b2)
        ah1 = jnp.dot(a, h1.astype(bf16), preferred_element_type=f32)
        h2 = _softplus(
            jnp.dot(ah1.astype(bf16), w2, preferred_element_type=f32) + b2)

        # layer 3: A @ h2 on MXU; the H->1 projection is a VPU/XLU lane
        # reduction (avoids a 1-column MXU pass).
        ah2 = jnp.dot(a, h2.astype(bf16), preferred_element_type=f32)  # (N, H)
        out_ref[...] = jnp.sum(ah2 * w3r, axis=-1, keepdims=True) + b3

    return kernel


def net_forward(a_mat, planes_f, lanes_f, params):
    """a_mat: (B,N,N), planes_f: (B,N,Fp), lanes_f: (B,N,1)."""
    wlt, blt, w1, b1, w2, b2, w3, b3 = params
    B, N, _ = a_mat.shape
    Fp = planes_f.shape[-1]
    Dl = wlt.shape[-1]
    H = w1.shape[-1]
    W = max(H, Dl)

    # Pack 13 tiny operands into 4 DMA buffers.
    feat = jnp.concatenate([planes_f, lanes_f], axis=-1)        # (B, N, Fp+1)
    w_slab = jnp.concatenate([w1, w2], axis=0)                  # (Fp+Dl+H, H)
    pad = lambda r: jnp.pad(r, ((0, 0), (0, W - r.shape[-1])))
    row_slab = jnp.concatenate(
        [pad(wlt), pad(blt), pad(b1), pad(b2), pad(w3.T), pad(b3)],
        axis=0)                                                 # (6, W)

    kernel = _make_net_kernel(Fp, Dl, H)
    grid_spec = pltpu.PrefetchScalarGridSpec(
        num_scalar_prefetch=0,
        grid=(B,),
        in_specs=[
            pl.BlockSpec((None, N, N), lambda b: (b, 0, 0)),        # A
            pl.BlockSpec((None, N, Fp + 1), lambda b: (b, 0, 0)),   # features
            pl.BlockSpec((Fp + Dl + H, H), lambda b: (0, 0)),       # W1|W2
            pl.BlockSpec((6, W), lambda b: (0, 0)),                 # row slab
        ],
        out_specs=pl.BlockSpec((None, N, 1), lambda b: (b, 0, 0)),
    )
    return pl.pallas_call(
        kernel,
        out_shape=jax.ShapeDtypeStruct((B, N, 1), jnp.float32),
        grid_spec=grid_spec,
        compiler_params=pltpu.CompilerParams(
            dimension_semantics=("parallel",)),
    )(a_mat, feat, w_slab, row_slab)


# ----------------------------- references -----------------------------------

def _bdot(a, b):
    # bf16 operands, f32 accumulation — mirrors the kernel's MXU dots.
    return jnp.matmul(a.astype(jnp.bfloat16), b.astype(jnp.bfloat16),
                      preferred_element_type=jnp.float32)


def reference_forward_f32(a_mat, planes_f, lanes_f, params):
    wlt, blt, w1, b1, w2, b2, w3, b3 = params
    sp = jax.nn.softplus
    lanes_t = sp(lanes_f @ wlt + blt)
    x0 = jnp.concatenate([planes_f, lanes_t], axis=-1)
    h1 = sp(a_mat @ x0 @ w1 + b1)
    h2 = sp(a_mat @ h1 @ w2 + b2)
    return a_mat @ h2 @ w3 + b3


def reference_forward_bf16(a_mat, planes_f, lanes_f, params):
    # Same math as the kernel (bf16 MXU operands, f32 accumulation, f32
    # elementwise) — used for the tight correctness check.
    wlt, blt, w1, b1, w2, b2, w3, b3 = params
    Fp = planes_f.shape[-1]
    sp = jax.nn.softplus
    lanes_t = sp(lanes_f * wlt + blt)
    w1p, w1l = w1[:Fp], w1[Fp:]
    z = _bdot(planes_f, w1p) + _bdot(lanes_t, w1l)
    h1 = sp(_bdot(a_mat, z) + b1)
    h2 = sp(_bdot(_bdot(a_mat, h1), w2) + b2)
    ah2 = _bdot(a_mat, h2)
    return jnp.sum(ah2 * w3.reshape(1, 1, -1), axis=-1, keepdims=True) + b3


# ----------------------------- init helpers ---------------------------------

def _xavier_uniform(key, fan_in, fan_out):
    bound = jnp.sqrt(6.0 / (fan_in + fan_out))
    # stored already transposed: (fan_in, fan_out), so kernel does x @ W
    return jax.random.uniform(key, (fan_in, fan_out), jnp.float32, -bound, bound)


def _bias(key, fan_in, fan_out):
    bound = 1.0 / jnp.sqrt(jnp.float32(fan_in))
    return jax.random.uniform(key, (1, fan_out), jnp.float32, -bound, bound)


if __name__ == "__main__":
    # B graphs, N nodes; features_in = Fp + Dl = 16, hidden = 32.
    B, N, Fp, Dl, H = 4, 16, 8, 8, 32
    key = jax.random.PRNGKey(0)
    ks = jax.random.split(key, 12)

    # inputs
    a_raw = jax.random.uniform(ks[0], (B, N, N), jnp.float32)
    a_mat = a_raw / jnp.sum(a_raw, axis=-1, keepdims=True)   # "normalized" adjacency
    planes_f = jax.random.normal(ks[1], (B, N, Fp), jnp.float32)
    lanes_f = jax.random.uniform(ks[2], (B, N, 1), jnp.float32) * 4.0

    # parameters (deterministic, xavier-uniform weights, torch-style biases)
    wlt = _xavier_uniform(ks[3], 1, Dl)          # num_of_lanes_transform
    blt = _bias(ks[4], 1, Dl)
    w1 = _xavier_uniform(ks[5], Fp + Dl, H)      # linear_1
    b1 = _bias(ks[6], Fp + Dl, H)
    w2 = _xavier_uniform(ks[7], H, H)            # linear_2
    b2 = _bias(ks[8], H, H)
    w3 = _xavier_uniform(ks[9], H, 1)            # linear_3
    b3 = _bias(ks[10], H, 1)
    params = (wlt, blt, w1, b1, w2, b2, w3, b3)

    out = jax.jit(net_forward)(a_mat, planes_f, lanes_f, params)
    out = jax.block_until_ready(out)
    assert out.shape == (B, N, 1)

    # Tight check against a reference that uses the same bf16-operand /
    # f32-accumulation math as the kernel.
    ref_bf16 = reference_forward_bf16(a_mat, planes_f, lanes_f, params)
    assert jnp.allclose(out, ref_bf16, atol=2e-3, rtol=2e-3), (
        float(jnp.max(jnp.abs(out - ref_bf16))))

    # Loose sanity check against the pure-f32 forward (bf16 MXU operands
    # introduce ~1e-2-scale deviations; semantics are unchanged).
    ref_f32 = reference_forward_f32(a_mat, planes_f, lanes_f, params)
    assert jnp.allclose(out, ref_f32, atol=1e-1, rtol=1e-1), (
        float(jnp.max(jnp.abs(out - ref_f32))))

    print("KERNEL_OK")
</pallas_src>

<mosaic_0001>
module attributes {stable_mosaic.version = 11 : i64} {
  func.func @kernel(%arg0: i32, %arg1: memref<1x16x16xf32, #tpu.memory_space<vmem>>, %arg2: memref<1x16x9xf32, #tpu.memory_space<vmem>>, %arg3: memref<48x32xf32, #tpu.memory_space<vmem>>, %arg4: memref<6x32xf32, #tpu.memory_space<vmem>>, %arg5: memref<1x16x1xf32, #tpu.memory_space<vmem>>) attributes {dimension_semantics = [#tpu.dimension_semantics<parallel>], iteration_bounds = array<i64: 4>, scalar_prefetch = 0 : i64, scratch_operands = 0 : i64, tpu.core_type = #tpu.core_type<tc>, window_params = [{transform_indices = @transform_0, window_bounds = array<i64: 1, 16, 16>}, {transform_indices = @transform_1, window_bounds = array<i64: 1, 16, 9>}, {pipeline_mode = #tpu.pipeline_mode<synchronous>, transform_indices = @transform_2, window_bounds = array<i64: 48, 32>}, {pipeline_mode = #tpu.pipeline_mode<synchronous>, transform_indices = @transform_3, window_bounds = array<i64: 6, 32>}, {transform_indices = @transform_4, window_bounds = array<i64: 1, 16, 1>}]} {
    %c0 = arith.constant 0 : index
    %c0_0 = arith.constant 0 : index
    %c0_1 = arith.constant 0 : index
    %0 = vector.load %arg1[%c0, %c0_0, %c0_1] : memref<1x16x16xf32, #tpu.memory_space<vmem>>, vector<1x16x16xf32>
    %1 = vector.shape_cast %0 : vector<1x16x16xf32> to vector<16x16xf32>
    %2 = arith.truncf %1 : vector<16x16xf32> to vector<16x16xbf16>
    %c0_2 = arith.constant 0 : index
    %c0_3 = arith.constant 0 : index
    %c0_4 = arith.constant 0 : index
    %3 = vector.load %arg2[%c0_2, %c0_3, %c0_4] : memref<1x16x9xf32, #tpu.memory_space<vmem>>, vector<1x16x9xf32>
    %4 = vector.shape_cast %3 : vector<1x16x9xf32> to vector<16x9xf32>
    %5 = vector.extract_strided_slice %4 {offsets = [0, 0], sizes = [16, 8], strides = [1, 1]} : vector<16x9xf32> to vector<16x8xf32>
    %6 = vector.extract_strided_slice %4 {offsets = [0, 8], sizes = [16, 1], strides = [1, 1]} : vector<16x9xf32> to vector<16x1xf32>
    %c0_5 = arith.constant 0 : index
    %c0_6 = arith.constant 0 : index
    %7 = vector.load %arg4[%c0_5, %c0_6] : memref<6x32xf32, #tpu.memory_space<vmem>>, vector<6x32xf32>
    %8 = vector.extract_strided_slice %7 {offsets = [0, 0], sizes = [1, 8], strides = [1, 1]} : vector<6x32xf32> to vector<1x8xf32>
    %9 = vector.extract_strided_slice %7 {offsets = [1, 0], sizes = [1, 8], strides = [1, 1]} : vector<6x32xf32> to vector<1x8xf32>
    %10 = vector.extract_strided_slice %7 {offsets = [2, 0], sizes = [1, 32], strides = [1, 1]} : vector<6x32xf32> to vector<1x32xf32>
    %11 = vector.extract_strided_slice %7 {offsets = [3, 0], sizes = [1, 32], strides = [1, 1]} : vector<6x32xf32> to vector<1x32xf32>
    %12 = vector.extract_strided_slice %7 {offsets = [4, 0], sizes = [1, 32], strides = [1, 1]} : vector<6x32xf32> to vector<1x32xf32>
    %13 = vector.extract_strided_slice %7 {offsets = [5, 0], sizes = [1, 1], strides = [1, 1]} : vector<6x32xf32> to vector<1x1xf32>
    %c0_7 = arith.constant 0 : index
    %c0_8 = arith.constant 0 : index
    %14 = vector.load %arg3[%c0_7, %c0_8] : memref<48x32xf32, #tpu.memory_space<vmem>>, vector<48x32xf32>
    %15 = vector.extract_strided_slice %14 {offsets = [0, 0], sizes = [16, 32], strides = [1, 1]} : vector<48x32xf32> to vector<16x32xf32>
    %16 = arith.truncf %15 : vector<16x32xf32> to vector<16x32xbf16>
    %17 = vector.extract_strided_slice %14 {offsets = [16, 0], sizes = [32, 32], strides = [1, 1]} : vector<48x32xf32> to vector<32x32xf32>
    %18 = arith.truncf %17 : vector<32x32xf32> to vector<32x32xbf16>
    %19 = vector.extract_strided_slice %16 {offsets = [0, 0], sizes = [8, 32], strides = [1, 1]} : vector<16x32xbf16> to vector<8x32xbf16>
    %20 = vector.extract_strided_slice %16 {offsets = [8, 0], sizes = [8, 32], strides = [1, 1]} : vector<16x32xbf16> to vector<8x32xbf16>
    %21 = vector.broadcast %6 : vector<16x1xf32> to vector<16x8xf32>
    %22 = vector.broadcast %8 : vector<1x8xf32> to vector<16x8xf32>
    %23 = arith.mulf %21, %22 : vector<16x8xf32>
    %24 = vector.broadcast %9 : vector<1x8xf32> to vector<16x8xf32>
    %25 = arith.addf %23, %24 : vector<16x8xf32>
    %cst = arith.constant 2.000000e+01 : f32
    %26 = vector.broadcast %cst : f32 to vector<16x8xf32>
    %27 = arith.cmpf ogt, %25, %26 : vector<16x8xf32>
    %cst_9 = arith.constant 2.000000e+01 : f32
    %28 = vector.broadcast %cst_9 : f32 to vector<16x8xf32>
    %29 = arith.minimumf %25, %28 : vector<16x8xf32>
    %30 = math.exp %29 : vector<16x8xf32>
    %31 = math.log1p %30 : vector<16x8xf32>
    %32 = arith.select %27, %25, %31 : vector<16x8xi1>, vector<16x8xf32>
    %33 = arith.truncf %5 : vector<16x8xf32> to vector<16x8xbf16>
    %cst_10 = arith.constant dense<0.000000e+00> : vector<16x32xf32>
    %34 = tpu.matmul %33, %19, %cst_10 {dimension_numbers = #tpu.dot_dimension_numbers<[1], [0], [0], [1], [0, 0, 1, 1], [], []>} : vector<16x8xbf16>, vector<8x32xbf16>, vector<16x32xf32> -> vector<16x32xf32>
    %35 = arith.truncf %32 : vector<16x8xf32> to vector<16x8xbf16>
    %cst_11 = arith.constant dense<0.000000e+00> : vector<16x32xf32>
    %36 = tpu.matmul %35, %20, %cst_11 {dimension_numbers = #tpu.dot_dimension_numbers<[1], [0], [0], [1], [0, 0, 1, 1], [], []>} : vector<16x8xbf16>, vector<8x32xbf16>, vector<16x32xf32> -> vector<16x32xf32>
    %37 = arith.addf %34, %36 : vector<16x32xf32>
    %38 = arith.truncf %37 : vector<16x32xf32> to vector<16x32xbf16>
    %cst_12 = arith.constant dense<0.000000e+00> : vector<16x32xf32>
    %39 = tpu.matmul %2, %38, %cst_12 {dimension_numbers = #tpu.dot_dimension_numbers<[1], [0], [0], [1], [0, 0, 1, 1], [], []>} : vector<16x16xbf16>, vector<16x32xbf16>, vector<16x32xf32> -> vector<16x32xf32>
    %40 = vector.broadcast %10 : vector<1x32xf32> to vector<16x32xf32>
    %41 = arith.addf %39, %40 : vector<16x32xf32>
    %cst_13 = arith.constant 2.000000e+01 : f32
    %42 = vector.broadcast %cst_13 : f32 to vector<16x32xf32>
    %43 = arith.cmpf ogt, %41, %42 : vector<16x32xf32>
    %cst_14 = arith.constant 2.000000e+01 : f32
    %44 = vector.broadcast %cst_14 : f32 to vector<16x32xf32>
    %45 = arith.minimumf %41, %44 : vector<16x32xf32>
    %46 = math.exp %45 : vector<16x32xf32>
    %47 = math.log1p %46 : vector<16x32xf32>
    %48 = arith.select %43, %41, %47 : vector<16x32xi1>, vector<16x32xf32>
    %49 = arith.truncf %48 : vector<16x32xf32> to vector<16x32xbf16>
    %cst_15 = arith.constant dense<0.000000e+00> : vector<16x32xf32>
    %50 = tpu.matmul %2, %49, %cst_15 {dimension_numbers = #tpu.dot_dimension_numbers<[1], [0], [0], [1], [0, 0, 1, 1], [], []>} : vector<16x16xbf16>, vector<16x32xbf16>, vector<16x32xf32> -> vector<16x32xf32>
    %51 = arith.truncf %50 : vector<16x32xf32> to vector<16x32xbf16>
    %cst_16 = arith.constant dense<0.000000e+00> : vector<16x32xf32>
    %52 = tpu.matmul %51, %18, %cst_16 {dimension_numbers = #tpu.dot_dimension_numbers<[1], [0], [0], [1], [0, 0, 1, 1], [], []>} : vector<16x32xbf16>, vector<32x32xbf16>, vector<16x32xf32> -> vector<16x32xf32>
    %53 = vector.broadcast %11 : vector<1x32xf32> to vector<16x32xf32>
    %54 = arith.addf %52, %53 : vector<16x32xf32>
    %cst_17 = arith.constant 2.000000e+01 : f32
    %55 = vector.broadcast %cst_17 : f32 to vector<16x32xf32>
    %56 = arith.cmpf ogt, %54, %55 : vector<16x32xf32>
    %cst_18 = arith.constant 2.000000e+01 : f32
    %57 = vector.broadcast %cst_18 : f32 to vector<16x32xf32>
    %58 = arith.minimumf %54, %57 : vector<16x32xf32>
    %59 = math.exp %58 : vector<16x32xf32>
    %60 = math.log1p %59 : vector<16x32xf32>
    %61 = arith.select %56, %54, %60 : vector<16x32xi1>, vector<16x32xf32>
    %62 = arith.truncf %61 : vector<16x32xf32> to vector<16x32xbf16>
    %cst_19 = arith.constant dense<0.000000e+00> : vector<16x32xf32>
    %63 = tpu.matmul %2, %62, %cst_19 {dimension_numbers = #tpu.dot_dimension_numbers<[1], [0], [0], [1], [0, 0, 1, 1], [], []>} : vector<16x16xbf16>, vector<16x32xbf16>, vector<16x32xf32> -> vector<16x32xf32>
    %64 = vector.broadcast %12 : vector<1x32xf32> to vector<16x32xf32>
    %65 = arith.mulf %63, %64 : vector<16x32xf32>
    %cst_20 = arith.constant dense<0.000000e+00> : vector<16xf32>
    %66 = vector.multi_reduction <add>, %65, %cst_20 [1] : vector<16x32xf32> to vector<16xf32>
    %67 = vector.shape_cast %66 : vector<16xf32> to vector<16x1xf32>
    %68 = vector.broadcast %13 : vector<1x1xf32> to vector<16x1xf32>
    %69 = arith.addf %67, %68 : vector<16x1xf32>
    %c0_21 = arith.constant 0 : index
    %c0_22 = arith.constant 0 : index
    %c0_23 = arith.constant 0 : index
    %70 = vector.load %arg5[%c0_21, %c0_22, %c0_23] : memref<1x16x1xf32, #tpu.memory_space<vmem>>, vector<1x16x1xf32>
    %71 = vector.shape_cast %70 : vector<1x16x1xf32> to vector<16x1xf32>
    %72 = vector.shape_cast %69 : vector<16x1xf32> to vector<1x16x1xf32>
    tpu.vector_store %arg5[%c0_21, %c0_22, %c0_23], %72 {strides = array<i32>} : memref<1x16x1xf32, #tpu.memory_space<vmem>>, vector<1x16x1xf32>,
    return
  }
  func.func @transform_0(%arg0: i32) -> (i32, i32, i32) {
    %c0_i32 = arith.constant 0 : i32
    %c0_i32_0 = arith.constant 0 : i32
    %c0_i32_1 = arith.constant 0 : i32
    return %arg0, %c0_i32, %c0_i32_0 : i32, i32, i32
  }
  func.func @transform_1(%arg0: i32) -> (i32, i32, i32) {
    %c0_i32 = arith.constant 0 : i32
    %c0_i32_0 = arith.constant 0 : i32
    %c0_i32_1 = arith.constant 0 : i32
    return %arg0, %c0_i32, %c0_i32_0 : i32, i32, i32
  }
  func.func @transform_2(%arg0: i32) -> (i32, i32) {
    %c0_i32 = arith.constant 0 : i32
    %c0_i32_0 = arith.constant 0 : i32
    %c0_i32_1 = arith.constant 0 : i32
    return %c0_i32, %c0_i32_0 : i32, i32
  }
  func.func @transform_3(%arg0: i32) -> (i32, i32) {
    %c0_i32 = arith.constant 0 : i32
    %c0_i32_0 = arith.constant 0 : i32
    %c0_i32_1 = arith.constant 0 : i32
    return %c0_i32, %c0_i32_0 : i32, i32
  }
  func.func @transform_4(%arg0: i32) -> (i32, i32, i32) {
    %c0_i32 = arith.constant 0 : i32
    %c0_i32_0 = arith.constant 0 : i32
    %c0_i32_1 = arith.constant 0 : i32
    return %arg0, %c0_i32, %c0_i32_0 : i32, i32, i32
  }
}

</mosaic_0001>

<bundles_post_ra>
// kernel: net_forward.1
= control target key start
LH: loop header
LB: loop body
LE: loop exit
PB: predicated region body
PF: predicated region fallthrough
CT: control target
= control target key end

     0   :  { %s621_s15 = smov 0   ;;  %s688_s0 = inlined_call_operand.vmem [shape: f32[4,16,16], index: 0, kind: input, shape index: {}]   ;;  %s689_s1 = inlined_call_operand.vmem [shape: f32[4,16,9], index: 1, kind: input, shape index: {}]   ;;  %s690_s2 = inlined_call_operand.vmem [shape: f32[48,32], index: 2, kind: input, shape index: {}]   ;;  %s691_s3 = inlined_call_operand.vmem [shape: f32[6,32], index: 3, kind: input, shape index: {}]   ;;  %s692_s4 = inlined_call_operand.vmem [shape: f32[4,16,1], index: 4, kind: output, shape index: {}]  }
   0x1 LB: > { %s531_s16 = sadd.s32 4294967295, %s593_s15   ;;  %p535_p0 = scmp.ge.s32.totalorder %s593_s15, 1  ;;  %s593_s15 = sphi %s621_s15, %s14_s15  }
   0x2   : > { %p172_p1 = scmp.lt.s32.totalorder %s593_s15, 5 }
   0x4   : > { %p173_p2 = pnand %p535_p0, %p172_p1 }
   0x5   : > { %p203_p3 = scmp.lt.s32.totalorder (!%p173_p2), %s531_s16, 3 }
   0x6   : > { %176 = sbr.rel (%p173_p2) target bundleno = 1043 (0x413), region = 36 }
   0xb   : > { %v595_v0 = vmov 8   ;;  %s694_s16 = smov (!%p203_p3, %s531_s16), 3  ;;  %v225_v4 = vld [vmem:[%s690_s2] sm:$0xff]  ;;  %vm285_vm0 = vcmask 1043456   ;;  %v226_v5 = vld [vmem:[%s690_s2 + $0x8] sm:$0xff]  ;;  %vm281_vm1 = vcmask 64512  }
   0xc   : > { %562 = vset.pattern.permute.xlu0 %v595_v0  ;;  %s629_s17 = sshll.u32 %s694_s16, 4  ;;  %v231_v6 = vpack.c.bf16 %v225_v4, %v225_v4  ;;  %v232_v7 = vpack.c.bf16 %v226_v5, %v226_v5  ;;  %v645_v10 = vld [vmem:[%s691_s3] sm:$0x3f]  ;;  %vm325_vm6 = vcmask 130048   ;;  %vm388_vm11 = vcmask 261120  }
   0xd   : > { %s212_s20 = scalar_lea.vmem %s689_s1, %s629_s17  ;;  %v245_v11 = vperm.slane %v645_v10, 0  ;;  %v248_v12 = vperm.slane %v645_v10, 1  ;;  %s207_s29 = scalar_lea.vmem %s688_s0, %s629_s17  ;;  %v324_v54 = vperm.slane %v645_v10, 2 }
   0xe   : > { %v222_v1 = vld [vmem:[%s212_s20] sm:$0xff]  ;;  %v223_v2 = vld [vmem:[%s212_s20 + $0x8] sm:$0xff]  ;;  %v307_v8 = vsel %vm285_vm0, %v231_v6, 0  ;;  %v287_v9 = vsel %vm285_vm0, %v232_v7, 0  ;;  %s217_s14 = scalar_lea.vmem %s692_s4, %s629_s17  ;;  %vm461_vm0 = vcmask 7168  }
   0xf   : > { %237 = vperm.xlu0 %562, %v222_v1   ;;  %v279_v3 = vpack.c.bf16 %v223_v2, %v222_v1  ;;  %316 = vmatpush.bf16.msra.mxu1 %v307_v8  ;;  %v219_v50 = vld [vmem:[%s207_s29] sm:$0xff]  ;;  %v220_v51 = vld [vmem:[%s207_s29 + $0x8] sm:$0xff] }
  0x10   : > { %296 = vmatpush.bf16.msra.mxu0 %v287_v9  ;;  %v654_v53 = vpack.c.bf16 %v220_v51, %v219_v50 }
  0x12   : > { %543 = vmatmul.msk.bf16.vlgmr.msra.gmra.mxu1 %vm281_vm1, %v279_v3 }
  0x17   : > { %242 = vperm.xlu0 %562, %v223_v2  }
  0x81   : > { %v238_v13 = vpop.permute.xlu0 %237 }
  0x82   : > { %v246_v14 = vmul.f32 %v245_v11, %v238_v13 }
  0x84   : > { %v249_v15 = vadd.f32 %v248_v12, %v246_v14 }
  0x86   : > { %v253_v16 = vmin.f32 %v249_v15, 20.0  ;;  %vm251_vm4 = vcmp.gt.f32.partialorder %v249_v15, 20.0 }
  0x88   : > { %v255_v17 = vmul.f32 1.442695, %v253_v16 }
  0x89   : > { %v243_v18 = vpop.permute.xlu0 %242 }
  0x8a   : > { %563 = vpow2.f32 %v255_v17  ;;  %v247_v19 = vmul.f32 %v245_v11, %v243_v18 }
  0x8c   : > { %v250_v20 = vadd.f32 %v248_v12, %v247_v19 }
  0x8e   : > { %v254_v21 = vmin.f32 %v250_v20, 20.0  ;;  %vm252_vm5 = vcmp.gt.f32.partialorder %v250_v20, 20.0 }
  0x8f   : > { %v318_v44 = vpop.f32.mrf.mxu1 }
  0x90   : > { %v564_v22 = vpop.eup %563  ;;  %v257_v23 = vmul.f32 1.442695, %v254_v21  ;;  %v229_v21 = vld [vmem:[%s690_s2 + $0x20] sm:$0xff] }
  0x91   : > { %v259_v24 = vadd.f32 1.0, %v564_v22  ;;  %v262_v26 = vmul.f32 -0.5, %v564_v22  ;;  %v265_v31 = vand.u32 2147483647, %v564_v22 }
  0x92   : > { %565 = vpow2.f32 %v257_v23 }
  0x93   : > { %567 = vlog2.f32 %v259_v24  ;;  %v263_v30 = vadd.f32 1.0, %v262_v26  ;;  %vm266_vm2 = vcmp.lt.f32.partialorder %v265_v31, 0.0004427343  ;;  %v227_v24 = vld [vmem:[%s690_s2 + $0x10] sm:$0xff] }
  0x95   : > { %v264_v35 = vmul.f32 %v564_v22, %v263_v30  ;;  %v230_v22 = vld [vmem:[%s690_s2 + $0x28] sm:$0xff]  ;;  %v387_v30 = vperm.slane %v645_v10, 3 }
  0x96   : > { %v234_v23 = vpack.c.bf16 %v230_v22, %v229_v21 }
  0x97   : > { %v320_v46 = vpop.f32.mrf.mxu1 }
  0x98   : > { %v566_v25 = vpop.eup %565  ;;  %398 = vmatpush.bf16.msrb.mxu0 %v234_v23 }
  0x99   : > { %v268_v27 = vadd.f32 1.0, %v566_v25  ;;  %v271_v28 = vmul.f32 -0.5, %v566_v25  ;;  %v568_v29 = vpop.eup %567  ;;  %v274_v34 = vand.u32 2147483647, %v566_v25 }
  0x9a   : > { %v261_v32 = vmul.f32 0.6931472, %v568_v29 }
  0x9b   : > { %569 = vlog2.f32 %v268_v27  ;;  %v272_v33 = vadd.f32 1.0, %v271_v28  ;;  %vm275_vm3 = vcmp.lt.f32.partialorder %v274_v34, 0.0004427343 }
  0x9c   : > { %v267_v37 = vsel %vm266_vm2, %v264_v35, %v261_v32 }
  0x9d   : > { %v273_v39 = vmul.f32 %v566_v25, %v272_v33  ;;  %v277_v41 = vsel %vm251_vm4, %v249_v15, %v267_v37  ;;  %v228_v25 = vld [vmem:[%s690_s2 + $0x18] sm:$0xff] }
  0x9e   : > { %v233_v26 = vpack.c.bf16 %v228_v25, %v227_v24 }
  0xa0   : > { %399 = vmatpush.bf16.msrb.mxu0 %v233_v26 }
  0xa1   : > { %v570_v36 = vpop.eup %569 }
  0xa2   : > { %v270_v38 = vmul.f32 0.6931472, %v570_v36 }
  0xa4   : > { %v276_v40 = vsel %vm275_vm3, %v273_v39, %v270_v38 }
  0xa5   : > { %v278_v42 = vsel %vm252_vm5, %v250_v20, %v276_v40 }
  0xa6   : > { %v280_v43 = vpack.c.bf16 %v278_v42, %v277_v41 }
  0xa8   : > { %542 = vmatmul.msk.bf16.vlgmr.msra.gmra.mxu0 %vm281_vm1, %v280_v43 }
 0x125   : > { %v298_v45 = vpop.f32.mrf.mxu0 }
 0x126   : > { %v319_v48 = vadd.f32 %v318_v44, %v298_v45 }
 0x12d   : > { %v300_v47 = vpop.f32.mrf.mxu0 }
 0x12e   : > { %v321_v49 = vadd.f32 %v320_v46, %v300_v47 }
 0x130   : > { %v323_v52 = vpack.c.bf16 %v321_v49, %v319_v48 }
 0x132   : > { %336 = vmatpush.bf16.msra.mxu2 %v323_v52 }
 0x135   : > { %544 = vmatmul.msk.bf16.vlgmr.msra.gmra.mxu2 %vm325_vm6, %v654_v53 }
 0x1b8   : > { %v338_v55 = vpop.f32.mrf.mxu2 }
 0x1b9   : > { %v339_v56 = vadd.f32 %v338_v55, %v324_v54 }
 0x1bb   : > { %v345_v57 = vmin.f32 %v339_v56, 20.0  ;;  %vm343_vm9 = vcmp.gt.f32.partialorder %v339_v56, 20.0 }
 0x1bd   : > { %v347_v58 = vmul.f32 1.442695, %v345_v57 }
 0x1bf   : > { %571 = vpow2.f32 %v347_v58 }
 0x1c0   : > { %v340_v59 = vpop.f32.mrf.mxu2 }
 0x1c1   : > { %v341_v60 = vadd.f32 %v340_v59, %v324_v54 }
 0x1c3   : > { %v346_v61 = vmin.f32 %v341_v60, 20.0  ;;  %vm344_vm10 = vcmp.gt.f32.partialorder %v341_v60, 20.0 }
 0x1c5   : > { %v572_v62 = vpop.eup %571  ;;  %v349_v63 = vmul.f32 1.442695, %v346_v61  ;;  %v449_v61 = vperm.slane %v645_v10, 4 }
 0x1c6   : > { %v351_v0 = vadd.f32 1.0, %v572_v62  ;;  %v354_v2 = vmul.f32 -0.5, %v572_v62  ;;  %v357_v7 = vand.u32 2147483647, %v572_v62 }
 0x1c7   : > { %573 = vpow2.f32 %v349_v63 }
 0x1c8   : > { %575 = vlog2.f32 %v351_v0  ;;  %v355_v6 = vadd.f32 1.0, %v354_v2  ;;  %vm358_vm7 = vcmp.lt.f32.partialorder %v357_v7, 0.0004427343 }
 0x1ca   : > { %v356_v12 = vmul.f32 %v572_v62, %v355_v6 }
 0x1cd   : > { %v574_v1 = vpop.eup %573 }
 0x1ce   : > { %v360_v3 = vadd.f32 1.0, %v574_v1  ;;  %v363_v4 = vmul.f32 -0.5, %v574_v1  ;;  %v576_v5 = vpop.eup %575  ;;  %v366_v11 = vand.u32 2147483647, %v574_v1 }
 0x1cf   : > { %v353_v8 = vmul.f32 0.6931472, %v576_v5 }
 0x1d0   : > { %577 = vlog2.f32 %v360_v3  ;;  %v364_v9 = vadd.f32 1.0, %v363_v4  ;;  %vm367_vm8 = vcmp.lt.f32.partialorder %v366_v11, 0.0004427343  ;;  %v458_v4 = vperm.slane %v645_v10, 5 }
 0x1d1   : > { %v359_v14 = vsel %vm358_vm7, %v356_v12, %v353_v8 }
 0x1d2   : > { %v365_v16 = vmul.f32 %v574_v1, %v364_v9  ;;  %v369_v18 = vsel %vm343_vm9, %v339_v56, %v359_v14 }
 0x1d6   : > { %v578_v13 = vpop.eup %577 }
 0x1d7   : > { %v362_v15 = vmul.f32 0.6931472, %v578_v13 }
 0x1d9   : > { %v368_v17 = vsel %vm367_vm8, %v365_v16, %v362_v15 }
 0x1da   : > { %v370_v19 = vsel %vm344_vm10, %v341_v60, %v368_v17 }
 0x1db   : > { %v371_v20 = vpack.c.bf16 %v370_v19, %v369_v18 }
 0x1dd   : > { %379 = vmatpush.bf16.msra.mxu3 %v371_v20 }
 0x1e0   : > { %545 = vmatmul.msk.bf16.vlgmr.msra.gmra.mxu3 %vm325_vm6, %v654_v53 }
 0x263   : > { %v381_v27 = vpop.f32.mrf.mxu3 }
 0x26b   : > { %v383_v28 = vpop.f32.mrf.mxu3 }
 0x26c   : > { %v386_v29 = vpack.c.bf16 %v383_v28, %v381_v27 }
 0x26e   : > { %546 = vmatmul.msk.bf16.vlgmr.msrb.gmra.mxu0 %vm388_vm11, %v386_v29 }
 0x2eb   : > { %v401_v31 = vpop.f32.mrf.mxu0 }
 0x2ec   : > { %v402_v32 = vadd.f32 %v401_v31, %v387_v30 }
 0x2ee   : > { %v408_v33 = vmin.f32 %v402_v32, 20.0  ;;  %vm406_vm14 = vcmp.gt.f32.partialorder %v402_v32, 20.0 }
 0x2f0   : > { %v410_v34 = vmul.f32 1.442695, %v408_v33 }
 0x2f2   : > { %579 = vpow2.f32 %v410_v34 }
 0x2f3   : > { %v403_v35 = vpop.f32.mrf.mxu0 }
 0x2f4   : > { %v404_v36 = vadd.f32 %v403_v35, %v387_v30 }
 0x2f6   : > { %v409_v37 = vmin.f32 %v404_v36, 20.0  ;;  %vm407_vm15 = vcmp.gt.f32.partialorder %v404_v36, 20.0 }
 0x2f8   : > { %v580_v38 = vpop.eup %579  ;;  %v412_v39 = vmul.f32 1.442695, %v409_v37 }
 0x2f9   : > { %v414_v40 = vadd.f32 1.0, %v580_v38  ;;  %v417_v42 = vmul.f32 -0.5, %v580_v38  ;;  %v420_v47 = vand.u32 2147483647, %v580_v38 }
 0x2fa   : > { %581 = vpow2.f32 %v412_v39 }
 0x2fb   : > { %583 = vlog2.f32 %v414_v40  ;;  %v418_v46 = vadd.f32 1.0, %v417_v42  ;;  %vm421_vm12 = vcmp.lt.f32.partialorder %v420_v47, 0.0004427343 }
 0x2fd   : > { %v419_v51 = vmul.f32 %v580_v38, %v418_v46 }
 0x300   : > { %v582_v41 = vpop.eup %581 }
 0x301   : > { %v423_v43 = vadd.f32 1.0, %v582_v41  ;;  %v426_v44 = vmul.f32 -0.5, %v582_v41  ;;  %v584_v45 = vpop.eup %583  ;;  %v429_v50 = vand.u32 2147483647, %v582_v41 }
 0x302   : > { %v416_v48 = vmul.f32 0.6931472, %v584_v45 }
 0x303   : > { %585 = vlog2.f32 %v423_v43  ;;  %v427_v49 = vadd.f32 1.0, %v426_v44  ;;  %vm430_vm13 = vcmp.lt.f32.partialorder %v429_v50, 0.0004427343 }
 0x304   : > { %v422_v54 = vsel %vm421_vm12, %v419_v51, %v416_v48 }
 0x305   : > { %v428_v56 = vmul.f32 %v582_v41, %v427_v49  ;;  %v432_v58 = vsel %vm406_vm14, %v402_v32, %v422_v54 }
 0x309   : > { %v586_v52 = vpop.eup %585 }
 0x30a   : > { %v425_v55 = vmul.f32 0.6931472, %v586_v52 }
 0x30c   : > { %v431_v57 = vsel %vm430_vm13, %v428_v56, %v425_v55 }
 0x30d   : > { %v433_v59 = vsel %vm407_vm15, %v404_v36, %v431_v57 }
 0x30e   : > { %v434_v60 = vpack.c.bf16 %v433_v59, %v432_v58 }
 0x310   : > { %442 = vmatpush.bf16.msrb.mxu1 %v434_v60 }
 0x313   : > { %547 = vmatmul.msk.bf16.vlgmr.msrb.gmra.mxu1 %vm325_vm6, %v654_v53 }
 0x390   : > { %v444_v62 = vpop.f32.mrf.mxu1 }
 0x391   : > { %v450_v63 = vmul.f32 %v449_v61, %v444_v62 }
 0x393   : > { %v452_v0 = vsel %vm388_vm11, %v450_v63, 0.0 }
 0x394   : > { %453 = vadd.xlane.f32.xlu1 %v452_v0 }
 0x398   : > { %v446_v1 = vpop.f32.mrf.mxu1 }
 0x399   : > { %v451_v2 = vmul.f32 %v449_v61, %v446_v1 }
 0x39b   : > { %v455_v3 = vsel %vm388_vm11, %v451_v2, 0.0 }
 0x39c   : > { %456 = vadd.xlane.f32.xlu1 %v455_v3 }
 0x407   : > { %v454_v53 = vpop.xlane.xlu1 %453 }
 0x408   : > { %v459_v5 = vadd.f32 %v458_v4, %v454_v53 }
 0x40a   : > { %462 = vst.msk [vmem:[%s217_s14] sm:$0xff] %vm461_vm0, %v459_v5 }
 0x40f   : > { %v457_v6 = vpop.xlane.xlu1 %456 }
 0x410   : > { %v460_v7 = vadd.f32 %v458_v4, %v457_v6 }
 0x412   : > { %463 = vst.msk [vmem:[%s217_s14 + $0x8] sm:$0xff] %vm461_vm0, %v460_v7 }
 0x413 PF: > { %s14_s15 = sadd.s32 1, %s593_s15  }
 0x414   : > { %p11_p4 = scmp.ge.s32.totalorder %s14_s15, 6  }
 0x416   :  { %13 = sbr.rel (!%p11_p4) target bundleno = 1 (0x1), region = 69 }

</bundles_post_ra>
